<compile_context>
chip_gen: v6e
topology: v6e:2x2x1
jax: 0.10.0
libtpu: 0.0.40
codegen_flags: <defaults>
</compile_context>

<pallas_src>
import jax
import jax.numpy as jnp
from jax.experimental import pallas as pl
from jax.experimental.pallas import tpu as pltpu


def _round_up(v, m):
    return (v + m - 1) // m * m


def _gcn_agg_first_kernel(x_ref, at_ref, wt_ref, b_ref, o_ref):
    """C_in <= C_out: aggregate over the graph first, then mix channels.

    x_ref : (B_T, C_in, T_T, N)    original input dtype
    at_ref: (N, Np)                A_hat^T (compute dtype), dest cols lane-padded
    wt_ref: (C_out, C_in)          W^T (compute dtype), resident
    b_ref : (C_out, 1)  f32        bias, resident
    o_ref : (B_T, C_out, T_T, Np)  output block
    """
    bt, cin, tt, n = x_ref.shape
    npad = o_ref.shape[3]
    at = at_ref[...]
    wt = wt_ref[...]          # single copy of W^T, reused for every (b, t)
    bias = b_ref[...]         # (C_out, 1) f32

    if tt % 8 == 0:
        # One flat MXU GEMM over all (b, c, t) rows; the reshape is a pure view.
        xf = x_ref[...].astype(at.dtype).reshape(bt * cin * tt, n)
        r4 = jnp.dot(xf, at, preferred_element_type=jnp.float32)
        r4 = r4.reshape(bt, cin, tt, npad).astype(wt.dtype)
        get_r = lambda b, t: r4[b, :, t, :]
    else:
        # Time tile not sublane-aligned: aggregate per (b, t) instead.
        get_r = lambda b, t: jnp.dot(
            x_ref[b, :, t, :].astype(at.dtype), at,
            preferred_element_type=jnp.float32).astype(wt.dtype)

    for b in range(bt):       # static unroll: B_T*T_T small MXU matmuls
        for t in range(tt):
            h = jnp.dot(wt, get_r(b, t), preferred_element_type=jnp.float32)
            o_ref[b, :, t, :] = jnp.maximum(h + bias, 0.0).astype(o_ref.dtype)


def _gcn_xform_first_kernel(x_ref, at_ref, wt_ref, b_ref, o_ref, h_ref):
    """C_in > C_out: mix channels first, then aggregate over the graph.

    h_ref: VMEM scratch (B_T, C_out, T_T, N) in the compute dtype.
    """
    bt, _cin, tt, n = x_ref.shape
    cout = o_ref.shape[1]
    npad = o_ref.shape[3]
    at = at_ref[...]
    wt = wt_ref[...]
    bias = b_ref[...]

    # Channel mix per (b, t) with the single resident W^T, into VMEM scratch.
    for b in range(bt):
        for t in range(tt):
            h = jnp.dot(wt, x_ref[b, :, t, :].astype(wt.dtype),
                        preferred_element_type=jnp.float32)
            h_ref[b, :, t, :] = h.astype(h_ref.dtype)

    if tt % 8 == 0:
        hf = h_ref[...].reshape(bt * cout * tt, n)          # pure layout view
        r4 = jnp.dot(hf, at, preferred_element_type=jnp.float32)
        r4 = r4.reshape(bt, cout, tt, npad)
        get_r = lambda b, t: r4[b, :, t, :]
    else:
        get_r = lambda b, t: jnp.dot(h_ref[b, :, t, :].astype(at.dtype), at,
                                     preferred_element_type=jnp.float32)

    for b in range(bt):
        for t in range(tt):
            o_ref[b, :, t, :] = jnp.maximum(get_r(b, t) + bias,
                                            0.0).astype(o_ref.dtype)


def _vmem_limit_bytes():
    """Per-chip VMEM envelope: ~3/4 of physical (96 MiB on v5e/v6e with their
    128 MiB, ~48 MiB on v7x's 64 MiB/TC); conservative fallback otherwise."""
    try:
        cap = int(pltpu.get_tpu_info().vmem_capacity_bytes)
    except Exception:                       # non-TPU host / API drift
        cap = 64 * 1024 * 1024
    return int(min(cap * 3 // 4, 96 * 1024 * 1024))


def _pick_tiles(B, T, block_bytes, resident_bytes, budget_bytes, max_unroll=64):
    """Pick (B_TILE, T_TILE).

    T_TILE prefers the full T (always layout-legal), else the largest
    multiple-of-8 divisor that fits the VMEM budget.  B_TILE is the largest
    divisor of B that still fits, keeps the unrolled per-(b, t) channel mix
    short, and leaves >= 2 grid steps when there is enough work (feeds both
    v7x TensorCores; on single-core v5e/v6e the extra step is noise).
    """
    def fits(bt, tt):
        return resident_bytes + block_bytes(bt, tt) <= budget_bytes

    t_cands = [T] + sorted((d for d in range(8, T, 8) if T % d == 0),
                           reverse=True)
    tt = next((c for c in t_cands if fits(1, c)), t_cands[-1])

    bt = 1
    for cand in sorted((d for d in range(1, B + 1) if B % d == 0), reverse=True):
        if cand > 1 and cand * tt > max_unroll:
            continue
        if fits(cand, tt):
            bt = cand
            break
    if (B // bt) * (T // tt) < 2 <= B:      # keep both v7x TensorCores busy
        bt = max((d for d in range(1, B // 2 + 1) if B % d == 0), default=1)
    return bt, tt


def spatial_conv_layer(x, w, bias, a_norm, *, compute_dtype=jnp.bfloat16,
                       out_dtype=None, pad_nodes=None):
    """SpatialConvLayer.forward: x [B, C_in, T, N] -> y [B, C_out, T, N].

    a_norm is the dense normalized adjacency D_in^{-1/2} A D_out^{-1/2} with
    A[i, j] = 1 iff edge j -> i (the fixed DGL graph, precomputed once).
    """
    B, C_in, T, N = x.shape
    C_out = w.shape[1]
    out_dtype = x.dtype if out_dtype is None else out_dtype

    # Lane padding of the node dim: only the *destination* columns of A_hat^T
    # (and hence the output lanes) are padded; x is read at natural width so no
    # extra HBM pass over the activations is introduced.
    if pad_nodes is None:
        pad_nodes = (N % 128 != 0) and (N > 128)
    Np = _round_up(N, 128) if pad_nodes else N

    a_t = a_norm.T
    if Np != N:
        a_t = jnp.pad(a_t, ((0, 0), (0, Np - N)))            # zero dest columns
    a_t = a_t.astype(compute_dtype)                          # (N, Np) resident
    w_t = w.T.astype(compute_dtype)                          # (C_out, C_in)
    b_col = bias.reshape(C_out, 1).astype(jnp.float32)

    agg_first = C_in <= C_out          # N^2 GEMM rows ride min(C_in, C_out)

    x_esize = jnp.dtype(x.dtype).itemsize
    c_esize = jnp.dtype(compute_dtype).itemsize
    o_esize = jnp.dtype(out_dtype).itemsize

    def block_bytes(bt, tt):
        in_b = bt * C_in * tt * N * x_esize
        out_b = bt * C_out * tt * Np * o_esize
        scr_b = 0 if agg_first else bt * C_out * tt * N * c_esize
        return 2 * (in_b + out_b) + scr_b                    # in/out double-buffered

    resident = 2 * (N * Np + C_out * C_in) * c_esize + 2 * C_out * 4

    vmem_limit = _vmem_limit_bytes()
    budget = int(vmem_limit * 0.6)
    BT, TT = _pick_tiles(B, T, block_bytes, resident, budget)
    if resident + block_bytes(1, TT) > vmem_limit:
        raise ValueError(
            "SpatialConvLayer Pallas kernel: one (b, t) block plus residents "
            f"needs {resident + block_bytes(1, TT)} B of VMEM "
            f"(limit {vmem_limit} B); split the node dimension or raise the "
            "VMEM limit.")

    grid = (B // BT, T // TT)
    kernel = _gcn_agg_first_kernel if agg_first else _gcn_xform_first_kernel
    scratch = [] if agg_first else [pltpu.VMEM((BT, C_out, TT, N), compute_dtype)]

    c_min = min(C_in, C_out)
    flops = 2 * B * T * (c_min * N * Np + C_in * C_out * Np)
    bytes_accessed = (x.size * x_esize
                      + (N * Np + C_out * C_in) * c_esize + C_out * 4
                      + B * C_out * T * Np * o_esize)

    # Residents (A_hat^T, W^T, bias) could be single-buffered via
    # pipeline_mode=pl.Buffered(1) to reclaim a little VMEM; left at the
    # default double-buffering for lowering safety (low value at these sizes).
    out = pl.pallas_call(
        kernel,
        out_shape=jax.ShapeDtypeStruct((B, C_out, T, Np), out_dtype),
        grid=grid,
        in_specs=[
            pl.BlockSpec((BT, C_in, TT, N), lambda i, j: (i, 0, j, 0)),
            pl.BlockSpec((N, Np), lambda i, j: (0, 0)),        # A_hat^T resident
            pl.BlockSpec((C_out, C_in), lambda i, j: (0, 0)),  # W^T     resident
            pl.BlockSpec((C_out, 1), lambda i, j: (0, 0)),     # bias    resident
        ],
        out_specs=pl.BlockSpec((BT, C_out, TT, Np), lambda i, j: (i, 0, j, 0)),
        scratch_shapes=scratch,
        compiler_params=pltpu.CompilerParams(
            dimension_semantics=("parallel", "parallel"),
            vmem_limit_bytes=vmem_limit),
        cost_estimate=pl.CostEstimate(
            flops=flops, transcendentals=0, bytes_accessed=bytes_accessed),
    )(x, a_t, w_t, b_col)

    if Np != N:
        out = out[..., :N]      # padded node lanes hold relu(bias): drop them
    return out


if __name__ == "__main__":
    B, C_in, C_out, T, N = 2, 4, 8, 8, 16

    key = jax.random.PRNGKey(0)
    k_adj, k_x, k_w, k_w2, k_x2 = jax.random.split(key, 5)

    # Deterministic synthetic graph: random directed edges + self loops.
    # adj[i, j] = 1 means edge j -> i (message flows from j to i).
    adj = (jax.random.uniform(k_adj, (N, N)) < 0.3).astype(jnp.float32)
    adj = jnp.maximum(adj, jnp.eye(N, dtype=jnp.float32))

    out_degs = jnp.maximum(adj.sum(axis=0), 1.0)    # out-degree of source nodes
    in_degs = jnp.maximum(adj.sum(axis=1), 1.0)     # in-degree of dest nodes
    norm1 = out_degs ** -0.5
    norm2 = in_degs ** -0.5
    a_norm = norm2[:, None] * adj * norm1[None, :]  # D_in^-1/2 A D_out^-1/2

    def torch_ref(xx, ww, bb):
        """Pure-JAX f32 reference mirroring the PyTorch forward exactly."""
        feats = jnp.transpose(xx, (3, 0, 2, 1))               # [N, B, T, C_in]
        feats = feats * norm1[:, None, None, None]
        feats = jnp.einsum('nbtc,co->nbto', feats, ww)
        rst = jnp.einsum('mn,nbto->mbto', adj, feats)
        rst = rst * norm2[:, None, None, None]
        rst = jax.nn.relu(rst + bb)
        return jax.nn.relu(jnp.transpose(rst, (1, 3, 2, 0)))  # [B, C_out, T, N]

    # Xavier-uniform weight, zero bias (matches GCN.reset_parameters).
    bound = (6.0 / (C_in + C_out)) ** 0.5
    w = jax.random.uniform(k_w, (C_in, C_out), jnp.float32, -bound, bound)
    bias = jnp.zeros((C_out,), jnp.float32)
    x = jax.random.normal(k_x, (B, C_in, T, N), jnp.float32)
    ref = torch_ref(x, w, bias)

    # Exact path (f32 MXU operands), aggregate-first kernel (C_out >= C_in).
    y32 = jax.block_until_ready(
        spatial_conv_layer(x, w, bias, a_norm, compute_dtype=jnp.float32))
    assert y32.shape == (B, C_out, T, N)
    assert jnp.allclose(y32, ref, atol=1e-4, rtol=1e-4), \
        float(jnp.max(jnp.abs(y32 - ref)))

    # Fast path: bf16 MXU operands, f32 accumulation.
    y = jax.block_until_ready(spatial_conv_layer(x, w, bias, a_norm))
    assert y.shape == (B, C_out, T, N)
    assert jnp.allclose(y, ref, atol=1e-1, rtol=1e-1), \
        float(jnp.max(jnp.abs(y - ref)))

    # Lane-padded path (forced): padded A_hat^T columns + output lane slicing.
    y_pad = jax.block_until_ready(
        spatial_conv_layer(x, w, bias, a_norm, compute_dtype=jnp.float32,
                           pad_nodes=True))
    assert y_pad.shape == (B, C_out, T, N)
    assert jnp.allclose(y_pad, ref, atol=1e-4, rtol=1e-4), \
        float(jnp.max(jnp.abs(y_pad - ref)))

    # Transform-first kernel (C_in > C_out), non-zero bias.
    C_in2, C_out2 = C_out, C_in
    bound2 = (6.0 / (C_in2 + C_out2)) ** 0.5
    w2 = jax.random.uniform(k_w2, (C_in2, C_out2), jnp.float32, -bound2, bound2)
    bias2 = jnp.full((C_out2,), 0.05, jnp.float32)
    x2 = jax.random.normal(k_x2, (B, C_in2, T, N), jnp.float32)
    ref2 = torch_ref(x2, w2, bias2)
    y2 = jax.block_until_ready(
        spatial_conv_layer(x2, w2, bias2, a_norm, compute_dtype=jnp.float32))
    assert y2.shape == (B, C_out2, T, N)
    assert jnp.allclose(y2, ref2, atol=1e-4, rtol=1e-4), \
        float(jnp.max(jnp.abs(y2 - ref2)))

    # bf16 output writeback option (halves the largest HBM store stream).
    y_bf16 = jax.block_until_ready(
        spatial_conv_layer(x, w, bias, a_norm, out_dtype=jnp.bfloat16))
    assert y_bf16.dtype == jnp.bfloat16
    assert jnp.allclose(y_bf16.astype(jnp.float32), ref, atol=1e-1, rtol=1e-1)

    print("KERNEL_OK")
</pallas_src>

<mosaic_0001>
module attributes {stable_mosaic.version = 11 : i64} {
  func.func @_gcn_agg_first_kernel(%arg0: i32, %arg1: i32, %arg2: memref<1x4x8x16xf32, #tpu.memory_space<vmem>>, %arg3: memref<16x16xf32, #tpu.memory_space<vmem>>, %arg4: memref<8x4xf32, #tpu.memory_space<vmem>>, %arg5: memref<8x1xf32, #tpu.memory_space<vmem>>, %arg6: memref<1x8x8x16xf32, #tpu.memory_space<vmem>>) attributes {dimension_semantics = [#tpu.dimension_semantics<parallel>, #tpu.dimension_semantics<parallel>], iteration_bounds = array<i64: 2, 1>, scalar_prefetch = 0 : i64, scratch_operands = 0 : i64, tpu.core_type = #tpu.core_type<tc>, window_params = [{transform_indices = @transform_0, window_bounds = array<i64: 1, 4, 8, 16>}, {pipeline_mode = #tpu.pipeline_mode<synchronous>, transform_indices = @transform_1, window_bounds = array<i64: 16, 16>}, {pipeline_mode = #tpu.pipeline_mode<synchronous>, transform_indices = @transform_2, window_bounds = array<i64: 8, 4>}, {pipeline_mode = #tpu.pipeline_mode<synchronous>, transform_indices = @transform_3, window_bounds = array<i64: 8, 1>}, {transform_indices = @transform_4, window_bounds = array<i64: 1, 8, 8, 16>}]} {
    %c0 = arith.constant 0 : index
    %c0_0 = arith.constant 0 : index
    %0 = vector.load %arg3[%c0, %c0_0] : memref<16x16xf32, #tpu.memory_space<vmem>>, vector<16x16xf32>
    %c0_1 = arith.constant 0 : index
    %c0_2 = arith.constant 0 : index
    %1 = vector.load %arg4[%c0_1, %c0_2] : memref<8x4xf32, #tpu.memory_space<vmem>>, vector<8x4xf32>
    %c0_3 = arith.constant 0 : index
    %c0_4 = arith.constant 0 : index
    %2 = vector.load %arg5[%c0_3, %c0_4] : memref<8x1xf32, #tpu.memory_space<vmem>>, vector<8x1xf32>
    %c0_5 = arith.constant 0 : index
    %c0_6 = arith.constant 0 : index
    %c0_7 = arith.constant 0 : index
    %c0_8 = arith.constant 0 : index
    %3 = vector.load %arg2[%c0_5, %c0_6, %c0_7, %c0_8] : memref<1x4x8x16xf32, #tpu.memory_space<vmem>>, vector<1x4x8x16xf32>
    %4 = vector.shape_cast %3 : vector<1x4x8x16xf32> to vector<32x16xf32>
    %cst = arith.constant dense<0.000000e+00> : vector<32x16xf32>
    %5 = tpu.matmul %4, %0, %cst {dimension_numbers = #tpu.dot_dimension_numbers<[1], [0], [0], [1], [0, 0, 1, 1], [], []>} : vector<32x16xf32>, vector<16x16xf32>, vector<32x16xf32> -> vector<32x16xf32>
    %6 = vector.shape_cast %5 : vector<32x16xf32> to vector<1x4x8x16xf32>
    %7 = vector.extract_strided_slice %6 {offsets = [0, 0, 0, 0], sizes = [1, 4, 1, 16], strides = [1, 1, 1, 1]} : vector<1x4x8x16xf32> to vector<1x4x1x16xf32>
    %8 = vector.shape_cast %7 : vector<1x4x1x16xf32> to vector<4x16xf32>
    %cst_9 = arith.constant dense<0.000000e+00> : vector<8x16xf32>
    %9 = tpu.matmul %1, %8, %cst_9 {dimension_numbers = #tpu.dot_dimension_numbers<[1], [0], [0], [1], [0, 0, 1, 1], [], []>} : vector<8x4xf32>, vector<4x16xf32>, vector<8x16xf32> -> vector<8x16xf32>
    %10 = vector.broadcast %2 : vector<8x1xf32> to vector<8x16xf32>
    %11 = arith.addf %9, %10 : vector<8x16xf32>
    %cst_10 = arith.constant 0.000000e+00 : f32
    %12 = vector.broadcast %cst_10 : f32 to vector<8x16xf32>
    %13 = arith.maximumf %11, %12 : vector<8x16xf32>
    %c0_11 = arith.constant 0 : index
    %c0_12 = arith.constant 0 : index
    %c0_13 = arith.constant 0 : index
    %c0_14 = arith.constant 0 : index
    %14 = vector.load %arg6[%c0_11, %c0_12, %c0_13, %c0_14] : memref<1x8x8x16xf32, #tpu.memory_space<vmem>>, vector<1x8x1x16xf32>
    %15 = vector.shape_cast %14 : vector<1x8x1x16xf32> to vector<8x16xf32>
    %16 = vector.shape_cast %13 : vector<8x16xf32> to vector<1x8x1x16xf32>
    tpu.vector_store %arg6[%c0_11, %c0_12, %c0_13, %c0_14], %16 {strides = array<i32>} : memref<1x8x8x16xf32, #tpu.memory_space<vmem>>, vector<1x8x1x16xf32>,
    %17 = vector.extract_strided_slice %6 {offsets = [0, 0, 1, 0], sizes = [1, 4, 1, 16], strides = [1, 1, 1, 1]} : vector<1x4x8x16xf32> to vector<1x4x1x16xf32>
    %18 = vector.shape_cast %17 : vector<1x4x1x16xf32> to vector<4x16xf32>
    %cst_15 = arith.constant dense<0.000000e+00> : vector<8x16xf32>
    %19 = tpu.matmul %1, %18, %cst_15 {dimension_numbers = #tpu.dot_dimension_numbers<[1], [0], [0], [1], [0, 0, 1, 1], [], []>} : vector<8x4xf32>, vector<4x16xf32>, vector<8x16xf32> -> vector<8x16xf32>
    %20 = vector.broadcast %2 : vector<8x1xf32> to vector<8x16xf32>
    %21 = arith.addf %19, %20 : vector<8x16xf32>
    %cst_16 = arith.constant 0.000000e+00 : f32
    %22 = vector.broadcast %cst_16 : f32 to vector<8x16xf32>
    %23 = arith.maximumf %21, %22 : vector<8x16xf32>
    %c0_17 = arith.constant 0 : index
    %c0_18 = arith.constant 0 : index
    %c1 = arith.constant 1 : index
    %c0_19 = arith.constant 0 : index
    %24 = vector.load %arg6[%c0_17, %c0_18, %c1, %c0_19] : memref<1x8x8x16xf32, #tpu.memory_space<vmem>>, vector<1x8x1x16xf32>
    %25 = vector.shape_cast %24 : vector<1x8x1x16xf32> to vector<8x16xf32>
    %26 = vector.shape_cast %23 : vector<8x16xf32> to vector<1x8x1x16xf32>
    tpu.vector_store %arg6[%c0_17, %c0_18, %c1, %c0_19], %26 {strides = array<i32>} : memref<1x8x8x16xf32, #tpu.memory_space<vmem>>, vector<1x8x1x16xf32>,
    %27 = vector.extract_strided_slice %6 {offsets = [0, 0, 2, 0], sizes = [1, 4, 1, 16], strides = [1, 1, 1, 1]} : vector<1x4x8x16xf32> to vector<1x4x1x16xf32>
    %28 = vector.shape_cast %27 : vector<1x4x1x16xf32> to vector<4x16xf32>
    %cst_20 = arith.constant dense<0.000000e+00> : vector<8x16xf32>
    %29 = tpu.matmul %1, %28, %cst_20 {dimension_numbers = #tpu.dot_dimension_numbers<[1], [0], [0], [1], [0, 0, 1, 1], [], []>} : vector<8x4xf32>, vector<4x16xf32>, vector<8x16xf32> -> vector<8x16xf32>
    %30 = vector.broadcast %2 : vector<8x1xf32> to vector<8x16xf32>
    %31 = arith.addf %29, %30 : vector<8x16xf32>
    %cst_21 = arith.constant 0.000000e+00 : f32
    %32 = vector.broadcast %cst_21 : f32 to vector<8x16xf32>
    %33 = arith.maximumf %31, %32 : vector<8x16xf32>
    %c0_22 = arith.constant 0 : index
    %c0_23 = arith.constant 0 : index
    %c2 = arith.constant 2 : index
    %c0_24 = arith.constant 0 : index
    %34 = vector.load %arg6[%c0_22, %c0_23, %c2, %c0_24] : memref<1x8x8x16xf32, #tpu.memory_space<vmem>>, vector<1x8x1x16xf32>
    %35 = vector.shape_cast %34 : vector<1x8x1x16xf32> to vector<8x16xf32>
    %36 = vector.shape_cast %33 : vector<8x16xf32> to vector<1x8x1x16xf32>
    tpu.vector_store %arg6[%c0_22, %c0_23, %c2, %c0_24], %36 {strides = array<i32>} : memref<1x8x8x16xf32, #tpu.memory_space<vmem>>, vector<1x8x1x16xf32>,
    %37 = vector.extract_strided_slice %6 {offsets = [0, 0, 3, 0], sizes = [1, 4, 1, 16], strides = [1, 1, 1, 1]} : vector<1x4x8x16xf32> to vector<1x4x1x16xf32>
    %38 = vector.shape_cast %37 : vector<1x4x1x16xf32> to vector<4x16xf32>
    %cst_25 = arith.constant dense<0.000000e+00> : vector<8x16xf32>
    %39 = tpu.matmul %1, %38, %cst_25 {dimension_numbers = #tpu.dot_dimension_numbers<[1], [0], [0], [1], [0, 0, 1, 1], [], []>} : vector<8x4xf32>, vector<4x16xf32>, vector<8x16xf32> -> vector<8x16xf32>
    %40 = vector.broadcast %2 : vector<8x1xf32> to vector<8x16xf32>
    %41 = arith.addf %39, %40 : vector<8x16xf32>
    %cst_26 = arith.constant 0.000000e+00 : f32
    %42 = vector.broadcast %cst_26 : f32 to vector<8x16xf32>
    %43 = arith.maximumf %41, %42 : vector<8x16xf32>
    %c0_27 = arith.constant 0 : index
    %c0_28 = arith.constant 0 : index
    %c3 = arith.constant 3 : index
    %c0_29 = arith.constant 0 : index
    %44 = vector.load %arg6[%c0_27, %c0_28, %c3, %c0_29] : memref<1x8x8x16xf32, #tpu.memory_space<vmem>>, vector<1x8x1x16xf32>
    %45 = vector.shape_cast %44 : vector<1x8x1x16xf32> to vector<8x16xf32>
    %46 = vector.shape_cast %43 : vector<8x16xf32> to vector<1x8x1x16xf32>
    tpu.vector_store %arg6[%c0_27, %c0_28, %c3, %c0_29], %46 {strides = array<i32>} : memref<1x8x8x16xf32, #tpu.memory_space<vmem>>, vector<1x8x1x16xf32>,
    %47 = vector.extract_strided_slice %6 {offsets = [0, 0, 4, 0], sizes = [1, 4, 1, 16], strides = [1, 1, 1, 1]} : vector<1x4x8x16xf32> to vector<1x4x1x16xf32>
    %48 = vector.shape_cast %47 : vector<1x4x1x16xf32> to vector<4x16xf32>
    %cst_30 = arith.constant dense<0.000000e+00> : vector<8x16xf32>
    %49 = tpu.matmul %1, %48, %cst_30 {dimension_numbers = #tpu.dot_dimension_numbers<[1], [0], [0], [1], [0, 0, 1, 1], [], []>} : vector<8x4xf32>, vector<4x16xf32>, vector<8x16xf32> -> vector<8x16xf32>
    %50 = vector.broadcast %2 : vector<8x1xf32> to vector<8x16xf32>
    %51 = arith.addf %49, %50 : vector<8x16xf32>
    %cst_31 = arith.constant 0.000000e+00 : f32
    %52 = vector.broadcast %cst_31 : f32 to vector<8x16xf32>
    %53 = arith.maximumf %51, %52 : vector<8x16xf32>
    %c0_32 = arith.constant 0 : index
    %c0_33 = arith.constant 0 : index
    %c4 = arith.constant 4 : index
    %c0_34 = arith.constant 0 : index
    %54 = vector.load %arg6[%c0_32, %c0_33, %c4, %c0_34] : memref<1x8x8x16xf32, #tpu.memory_space<vmem>>, vector<1x8x1x16xf32>
    %55 = vector.shape_cast %54 : vector<1x8x1x16xf32> to vector<8x16xf32>
    %56 = vector.shape_cast %53 : vector<8x16xf32> to vector<1x8x1x16xf32>
    tpu.vector_store %arg6[%c0_32, %c0_33, %c4, %c0_34], %56 {strides = array<i32>} : memref<1x8x8x16xf32, #tpu.memory_space<vmem>>, vector<1x8x1x16xf32>,
    %57 = vector.extract_strided_slice %6 {offsets = [0, 0, 5, 0], sizes = [1, 4, 1, 16], strides = [1, 1, 1, 1]} : vector<1x4x8x16xf32> to vector<1x4x1x16xf32>
    %58 = vector.shape_cast %57 : vector<1x4x1x16xf32> to vector<4x16xf32>
    %cst_35 = arith.constant dense<0.000000e+00> : vector<8x16xf32>
    %59 = tpu.matmul %1, %58, %cst_35 {dimension_numbers = #tpu.dot_dimension_numbers<[1], [0], [0], [1], [0, 0, 1, 1], [], []>} : vector<8x4xf32>, vector<4x16xf32>, vector<8x16xf32> -> vector<8x16xf32>
    %60 = vector.broadcast %2 : vector<8x1xf32> to vector<8x16xf32>
    %61 = arith.addf %59, %60 : vector<8x16xf32>
    %cst_36 = arith.constant 0.000000e+00 : f32
    %62 = vector.broadcast %cst_36 : f32 to vector<8x16xf32>
    %63 = arith.maximumf %61, %62 : vector<8x16xf32>
    %c0_37 = arith.constant 0 : index
    %c0_38 = arith.constant 0 : index
    %c5 = arith.constant 5 : index
    %c0_39 = arith.constant 0 : index
    %64 = vector.load %arg6[%c0_37, %c0_38, %c5, %c0_39] : memref<1x8x8x16xf32, #tpu.memory_space<vmem>>, vector<1x8x1x16xf32>
    %65 = vector.shape_cast %64 : vector<1x8x1x16xf32> to vector<8x16xf32>
    %66 = vector.shape_cast %63 : vector<8x16xf32> to vector<1x8x1x16xf32>
    tpu.vector_store %arg6[%c0_37, %c0_38, %c5, %c0_39], %66 {strides = array<i32>} : memref<1x8x8x16xf32, #tpu.memory_space<vmem>>, vector<1x8x1x16xf32>,
    %67 = vector.extract_strided_slice %6 {offsets = [0, 0, 6, 0], sizes = [1, 4, 1, 16], strides = [1, 1, 1, 1]} : vector<1x4x8x16xf32> to vector<1x4x1x16xf32>
    %68 = vector.shape_cast %67 : vector<1x4x1x16xf32> to vector<4x16xf32>
    %cst_40 = arith.constant dense<0.000000e+00> : vector<8x16xf32>
    %69 = tpu.matmul %1, %68, %cst_40 {dimension_numbers = #tpu.dot_dimension_numbers<[1], [0], [0], [1], [0, 0, 1, 1], [], []>} : vector<8x4xf32>, vector<4x16xf32>, vector<8x16xf32> -> vector<8x16xf32>
    %70 = vector.broadcast %2 : vector<8x1xf32> to vector<8x16xf32>
    %71 = arith.addf %69, %70 : vector<8x16xf32>
    %cst_41 = arith.constant 0.000000e+00 : f32
    %72 = vector.broadcast %cst_41 : f32 to vector<8x16xf32>
    %73 = arith.maximumf %71, %72 : vector<8x16xf32>
    %c0_42 = arith.constant 0 : index
    %c0_43 = arith.constant 0 : index
    %c6 = arith.constant 6 : index
    %c0_44 = arith.constant 0 : index
    %74 = vector.load %arg6[%c0_42, %c0_43, %c6, %c0_44] : memref<1x8x8x16xf32, #tpu.memory_space<vmem>>, vector<1x8x1x16xf32>
    %75 = vector.shape_cast %74 : vector<1x8x1x16xf32> to vector<8x16xf32>
    %76 = vector.shape_cast %73 : vector<8x16xf32> to vector<1x8x1x16xf32>
    tpu.vector_store %arg6[%c0_42, %c0_43, %c6, %c0_44], %76 {strides = array<i32>} : memref<1x8x8x16xf32, #tpu.memory_space<vmem>>, vector<1x8x1x16xf32>,
    %77 = vector.extract_strided_slice %6 {offsets = [0, 0, 7, 0], sizes = [1, 4, 1, 16], strides = [1, 1, 1, 1]} : vector<1x4x8x16xf32> to vector<1x4x1x16xf32>
    %78 = vector.shape_cast %77 : vector<1x4x1x16xf32> to vector<4x16xf32>
    %cst_45 = arith.constant dense<0.000000e+00> : vector<8x16xf32>
    %79 = tpu.matmul %1, %78, %cst_45 {dimension_numbers = #tpu.dot_dimension_numbers<[1], [0], [0], [1], [0, 0, 1, 1], [], []>} : vector<8x4xf32>, vector<4x16xf32>, vector<8x16xf32> -> vector<8x16xf32>
    %80 = vector.broadcast %2 : vector<8x1xf32> to vector<8x16xf32>
    %81 = arith.addf %79, %80 : vector<8x16xf32>
    %cst_46 = arith.constant 0.000000e+00 : f32
    %82 = vector.broadcast %cst_46 : f32 to vector<8x16xf32>
    %83 = arith.maximumf %81, %82 : vector<8x16xf32>
    %c0_47 = arith.constant 0 : index
    %c0_48 = arith.constant 0 : index
    %c7 = arith.constant 7 : index
    %c0_49 = arith.constant 0 : index
    %84 = vector.load %arg6[%c0_47, %c0_48, %c7, %c0_49] : memref<1x8x8x16xf32, #tpu.memory_space<vmem>>, vector<1x8x1x16xf32>
    %85 = vector.shape_cast %84 : vector<1x8x1x16xf32> to vector<8x16xf32>
    %86 = vector.shape_cast %83 : vector<8x16xf32> to vector<1x8x1x16xf32>
    tpu.vector_store %arg6[%c0_47, %c0_48, %c7, %c0_49], %86 {strides = array<i32>} : memref<1x8x8x16xf32, #tpu.memory_space<vmem>>, vector<1x8x1x16xf32>,
    return
  }
  func.func @transform_0(%arg0: i32, %arg1: i32) -> (i32, i32, i32, i32) {
    %c0_i32 = arith.constant 0 : i32
    %c0_i32_0 = arith.constant 0 : i32
    %c0_i32_1 = arith.constant 0 : i32
    return %arg0, %c0_i32, %arg1, %c0_i32_0 : i32, i32, i32, i32
  }
  func.func @transform_1(%arg0: i32, %arg1: i32) -> (i32, i32) {
    %c0_i32 = arith.constant 0 : i32
    %c0_i32_0 = arith.constant 0 : i32
    %c0_i32_1 = arith.constant 0 : i32
    return %c0_i32, %c0_i32_0 : i32, i32
  }
  func.func @transform_2(%arg0: i32, %arg1: i32) -> (i32, i32) {
    %c0_i32 = arith.constant 0 : i32
    %c0_i32_0 = arith.constant 0 : i32
    %c0_i32_1 = arith.constant 0 : i32
    return %c0_i32, %c0_i32_0 : i32, i32
  }
  func.func @transform_3(%arg0: i32, %arg1: i32) -> (i32, i32) {
    %c0_i32 = arith.constant 0 : i32
    %c0_i32_0 = arith.constant 0 : i32
    %c0_i32_1 = arith.constant 0 : i32
    return %c0_i32, %c0_i32_0 : i32, i32
  }
  func.func @transform_4(%arg0: i32, %arg1: i32) -> (i32, i32, i32, i32) {
    %c0_i32 = arith.constant 0 : i32
    %c0_i32_0 = arith.constant 0 : i32
    %c0_i32_1 = arith.constant 0 : i32
    return %arg0, %c0_i32, %arg1, %c0_i32_0 : i32, i32, i32, i32
  }
}

</mosaic_0001>

<bundles_post_ra>
// kernel: tpu_custom_call.1
= control target key start
LH: loop header
LB: loop body
LE: loop exit
PB: predicated region body
PF: predicated region fallthrough
CT: control target
= control target key end

     0   :  { %9 = vsyncpa [#allocation3], 0  ;;  %s2400_s0 = inlined_call_operand.hbm [shape: f32[2,4,8,16], index: 0, kind: input, shape index: {}]   ;;  %s2401_s1 = inlined_call_operand.vmem [shape: f32[16,16], index: 1, kind: input, shape index: {}]   ;;  %s2402_s2 = inlined_call_operand.vmem [shape: f32[8,4], index: 2, kind: input, shape index: {}]   ;;  %s2403_s3 = inlined_call_operand.vmem [shape: f32[8,1], index: 3, kind: input, shape index: {}]   ;;  %s2404_s4 = inlined_call_operand.hbm [shape: f32[2,8,8,16], index: 4, kind: output, shape index: {}]  }
   0x1   :  { %11 = vsyncpa [#allocation3 + $0x1], 0 }
   0x2   :  { %12 = vsyncpa [#allocation4], 0 }
   0x3   :  { %14 = vsyncpa [#allocation4 + $0x1], 0  ;;  %s1946_s15 = smov 0   ;;  %s1948_s16 = smov 0  }
   0x4   :  { %s1950_s17 = smov 0   ;;  %s1952_s18 = smov 0  }
   0x5   :  { %s1954_s19 = smov 0   ;;  %s1956_s20 = smov 0  }
   0x6 LB: > { %s1621_s21 = sadd.s32 4294967295, %s1909_s20   ;;  %s1622_s22 = sadd.s32 4294967294, %s1909_s20   ;;  %s1909_s20 = sphi %s1956_s20, %s20_s20   ;;  %s1905_s19 = sphi %s1954_s19, %s2415_s19   ;;  %s1901_s18 = sphi %s1952_s18, %s2414_s18   ;;  %s1897_s17 = sphi %s1950_s17, %s2413_s17   ;;  %s1893_s16 = sphi %s1948_s16, %s2412_s16   ;;  %s1889_s15 = sphi %s1946_s15, %s2411_s15  }
   0x7   : > { %s32_s23 = sadd.s32 1, %s1905_s19  ;;  %s41_s24 = sadd.s32 1, %s1897_s17 }
   0x8   : > { %p34_p0 = scmp.ge.s32.totalorder %s32_s23, 2  ;;  %p48_p1 = scmp.ne.s32.totalorder %s1897_s17, %s1893_s16 }
   0x9   : > { %p49_p2 = scmp.eq.s32.totalorder %s1909_s20, 0  ;;  %p54_p3 = scmp.ne.s32.totalorder %s1893_s16, %s1889_s15 }
   0xa   : > { %s2417_s23 = smov (%p34_p0, %s32_s23), 0  ;;  %p55_p5 = scmp.eq.s32.totalorder %s1621_s21, 0 }
   0xb   : > { %p1987_p4 = por %p49_p2, %p48_p1  ;;  %s36_s26 = ssub.s32 %s1905_s19, %s2417_s23 }
   0xc   : > { %p143_p6 = scmp.eq.s32.totalorder %s1621_s21, 1  ;;  %p39_p7 = scmp.eq.s32.totalorder %s36_s26, 0 }
   0xd   : > { %p1993_p8 = por %p55_p5, %p54_p3  ;;  %p149_p10 = scmp.eq.s32.totalorder %s1622_s22, 1 }
   0xe   : > { %p1997_p9 = por %p143_p6, %p48_p1  ;;  %p1742_p13 = scmp.lt.s32.totalorder %s1909_s20, 2 }
   0xf   : > { %s2002_s29 = scalar_select %p39_p7, %s1897_s17, %s41_s24  }
  0x10   : > { %p2004_p11 = por %p149_p10, %p54_p3  ;;  %s178_s5 = sand.u32 1, %s1897_s17  }
  0x11   : > { %s1625_s6 = sshll.u32 %s178_s5, 5  ;;  %s1656_s7 = sshll.u32 %s1905_s19, 9 }
  0x12   : > { %s189_s10 = scalar_lea.hbm %s2400_s0, %s1656_s7  ;;  %s182_s11 = scalar_lea.vmem [#allocation2], %s1625_s6 }
  0x13   : > { %s190_s12 = sshll.u32 %s182_s11, 4  ;;  %p2017_p0 = pnand %p1742_p13, %p1987_p4  ;;  %s191_s12 = int_to_ptr.vmem [resolvable:$true] %s190_s12 }
  0x14   : > { %p1628_p1 = scmp.ge.s32.totalorder %s1909_s20, 1  ;;  %s179_s14 = scalar_lea.sflag [#allocation3], %s178_s5 }
  0x15   : > { %p1803_p2 = pneg %p2017_p0  ;;  %s1814_s21 = scalar_lea.vmem %s191_s12, 512 }
  0x16   : > { %p1815_p3 = scmp.ne.s32.totalorder %s191_s12, %s1814_s21  ;;  %s1911_s22 = smov [#allocation2]  }
  0x17   : > { %s1819_s24 = sshll.u32 %s1911_s22, 4  ;;  %s1820_s24 = int_to_ptr.vmem [resolvable:$false] %s1819_s24 }
  0x18   : > { %p1817_p5 = pnand %p1815_p3, %p1803_p2  ;;  %s1821_s26 = scalar_lea.vmem %s1820_s24, 1024 }
  0x19   : > { %p1822_p7 = scmp.lt.s32.totalorder %s191_s12, %s1820_s24  ;;  %p1823_p10 = scmp.lt.s32.totalorder %s1821_s26, %s1814_s21 }
  0x1a   : > { %p1818_p6 = pneg %p1817_p5 }
  0x1b   : > { %p1824_p12 = por %p1823_p10, %p1822_p7 }
  0x1d   : > { %p1825_p4 = pnand %p1824_p12, %p1818_p6 }
  0x1f   : > { %1828 = shalt.err (!%p1825_p4)
}
  0x20   : > { %s1912_s25 = smov 128   ;;  %s1913_s5 = smov 8  }
  0x21   : > { %1737 = dma.hbm_to_vmem [thread:$0]  (!%p2017_p0), %s189_s10, 512, %s191_s12, %s179_s14, %s1912_s25, %s1912_s25, %s1913_s5  }
  0x22   : > { %p198_p13 = scmp.lt.s32.totalorder %s1909_s20, 3 }
  0x24   : > { %p199_p2 = pnand %p1628_p1, %p198_p13 }
  0x25   : > { %s2030_s6 = sand.u32 (!%p199_p2), 1, %s1893_s16  }
  0x26   : > { %202 = sbr.rel (%p199_p2) target bundleno = 503 (0x1f7), region = 36  ;;  %s1629_s7 = sshll.u32 (!%p199_p2), %s2030_s6, 5 }
  0x27   : > { %s205_s8 = scalar_lea.sflag (!%p199_p2), [#allocation3], %s2030_s6  ;;  %s208_s9 = scalar_lea.vmem (!%p199_p2), [#allocation2], %s1629_s7 }
  0x2b   : > { %1880 = dma.done.wait (%p1993_p8), %s205_s8, 512  }
  0x2c   : > { %1882 = vsyncadd (%p1993_p8), %s205_s8, 4294966784  ;;  %vm241_vm0 = vcmask 130048   ;;  %v234_v0 = vld [vmem:[%s2401_s1 + $0x8] sm:$0xff]  ;;  %v233_v1 = vld [vmem:[%s2401_s1] sm:$0xff]  ;;  %v1914_v6 = vmov 0.0   ;;  %vm1915_vm1 = vmmov 0  }
  0x2d   : > { %v237_v2 = vld [vmem:[%s208_s9] sm:$0xff]  ;;  %1680 = vmatprep.subr.mxu0 %v234_v0  ;;  %v238_v3 = vld [vmem:[%s208_s9 + $0x8] sm:$0xff]  ;;  %v239_v4 = vld [vmem:[%s208_s9 + $0x10] sm:$0xff]  ;;  %1690 = vmatprep.subr.mxu1 %v1914_v6  ;;  %v1916_v8 = vmov 0   ;;  %vm349_vm2 = vcmask 1041409   ;;  %vm352_vm3 = vcmask 1042434  }
  0x2e   : > { %1684 = vmatprep.mubr.msk.f32.mxu0 %vm241_vm0, %v237_v2  ;;  %1681 = vmatpush3.msra.mxu0 %v234_v0  ;;  %v240_v5 = vld [vmem:[%s208_s9 + $0x18] sm:$0xff]  ;;  %v236_v7 = vld [vmem:[%s2403_s3] sm:$0xff]  ;;  %vm355_vm4 = vcmask 1043459   ;;  %vm361_vm5 = vcmask 1043456   ;;  %vm357_vm6 = vcmask 31744   ;;  %s1630_s24 = sshll.u32 %s2030_s6, 6 }
  0x2f   : > { %1682 = vmatprep.subr.mxu0 %v233_v1  ;;  %1692 = vmatprep.mubr.msk.f32.mxu1 %vm1915_vm1, %v1914_v6  ;;  %v235_v32 = vld [vmem:[%s2402_s2] sm:$0xff]  ;;  %v1917_v2 = vmov 1966171168   ;;  %vm493_vm7 = vcmask 122880   ;;  %s2171_s26 = scalar_lea.vmem [#allocation5], %s1630_s24  ;;  %s1657_s25 = sshll.u32 %s1901_s18, 10 }
  0x30   : > { %1683 = vmatpush3.msra.mxu0 %v233_v1  ;;  %1800 = vset.pattern.permute.xlu0 %v1916_v8  ;;  %s1536_s5 = sshll.u32 %s2171_s26, 4  ;;  %s2342_s8 = scalar_lea.hbm %s2404_s4, %s1657_s25  ;;  %s2344_s5 = int_to_ptr.vmem [resolvable:$true] %s1536_s5 }
  0x31   : > { %1685 = vmatmul.mubr.msk.f32.vlgmr.msra.gmra.mxu0 %vm241_vm0, %v238_v3  ;;  %1705 = vmatprep.subr.mxu0 %v1914_v6  ;;  %v438_v3 = vunpack.c.l.s4 %v1917_v2  ;;  %s1522_s9 = scalar_lea.sflag [#allocation4], %s2030_s6  ;;  %s1829_s10 = scalar_lea.vmem %s2344_s5, 1024 }
  0x32   : > { %1687 = vmatprep.mubr.msk.f32.mxu0 %vm241_vm0, %v239_v4  ;;  %341 = vperm.xlu0 %1800, %v236_v7   ;;  %v440_v4 = vlaneseq  ;;  %p1830_p8 = scmp.ne.s32.totalorder %s2344_s5, %s1829_s10  ;;  %s1918_s11 = smov [#allocation5]  }
  0x33   : > { %s1833_s12 = sshll.u32 %s1918_s11, 4  ;;  %s1834_s12 = int_to_ptr.vmem [resolvable:$false] %s1833_s12 }
  0x34   : > { %v441_v7 = vshrl.u32 %v440_v4, 7  ;;  %p1831_p12 = pnand %p1830_p8, %p1997_p9  ;;  %s1835_s13 = scalar_lea.vmem %s1834_s12, 2048 }
  0x35   : > { %1688 = vmatmul.mubr.msk.f32.gmra.mxu0 %vm241_vm0, %v240_v5  ;;  %v439_v5 = vunpack.c.0.s8 %v438_v3  ;;  %p1836_p1 = scmp.lt.s32.totalorder %s2344_s5, %s1834_s12  ;;  %p1837_p3 = scmp.lt.s32.totalorder %s1835_s13, %s1829_s10 }
  0x36   : > { %1707 = vmatprep.mubr.msk.f32.mxu0 %vm1915_vm1, %v1914_v6  ;;  %p1832_p0 = pneg %p1831_p12 }
  0x37   : > { %p1838_p5 = por %p1837_p3, %p1836_p1 }
  0x39   : > { %p1839_p6 = pnand %p1838_p5, %p1832_p0 }
  0xad   : > { %v2154_v8 = vpop.permute.xlu0 %341 }
  0xf1   : > { %v2053_v9 = vpop.f32.mrf.mxu0 }
  0xf2   : > { %v348_v11 = vrot.slane %v2053_v9, 7  ;;  %v793_v15 = vrot.slane %v2053_v9, 2  ;;  %v1084_v19 = vrot.slane %v2053_v9, 4  ;;  %v648_v21 = vrot.slane %v2053_v9, 1 }
  0xf3   : > { %v2055_v10 = vpop.f32.mrf.mxu0  ;;  %v1376_v42 = vrot.slane %v2053_v9, 6  ;;  %v938_v52 = vrot.slane %v2053_v9, 3  ;;  %v1230_v60 = vrot.slane %v2053_v9, 5 }
  0xf4   : > { %v792_v13 = vrot.slane %v2055_v10, 3  ;;  %v502_v14 = vrot.slane %v2055_v10, 1  ;;  %v1083_v16 = vrot.slane %v2055_v10, 5  ;;  %v350_v18 = vsel %vm349_vm2, %v348_v11, %v2055_v10 }
  0xf5   : > { %v2058_v12 = vpop.f32.mrf.mxu0  ;;  %v647_v20 = vrot.slane %v2055_v10, 2  ;;  %v1375_v29 = vrot.slane %v2055_v10, 7  ;;  %v937_v43 = vrot.slane %v2055_v10, 4  ;;  %v1229_v56 = vrot.slane %v2055_v10, 6 }
  0xf6   : > { %v354_v26 = vrot.slane %v2058_v12, 5  ;;  %v794_v27 = vsel %vm349_vm2, %v793_v15, %v792_v13  ;;  %v503_v28 = vsel %vm349_vm2, %v2053_v9, %v502_v14  ;;  %v1085_v33 = vsel %vm349_vm2, %v1084_v19, %v1083_v16 }
  0xf7   : > { %v2064_v17 = vpop.f32.mrf.mxu0  ;;  %v506_v39 = vrot.slane %v2058_v12, 6  ;;  %v1088_v40 = vrot.slane %v2058_v12, 2  ;;  %v649_v41 = vsel %vm349_vm2, %v648_v21, %v647_v20  ;;  %v651_v46 = vrot.slane %v2058_v12, 7 }
  0xf8   : > { %v351_v22 = vrot.slane %v2064_v17, 6  ;;  %v795_v23 = vrot.slane %v2064_v17, 1  ;;  %v504_v24 = vrot.slane %v2064_v17, 7  ;;  %v1086_v25 = vrot.slane %v2064_v17, 3 }
  0xf9   : > { %v1378_v34 = vrot.slane %v2064_v17, 5  ;;  %v1377_v47 = vsel %vm349_vm2, %v1376_v42, %v1375_v29  ;;  %v650_v48 = vsel %vm352_vm3, %v2064_v17, %v649_v41  ;;  %v940_v50 = vrot.slane %v2064_v17, 2 }
  0xfa   : > { %v353_v30 = vsel %vm352_vm3, %v351_v22, %v350_v18  ;;  %v796_v31 = vsel %vm352_vm3, %v795_v23, %v794_v27  ;;  %v505_v37 = vsel %vm352_vm3, %v504_v24, %v503_v28  ;;  %v1087_v38 = vsel %vm352_vm3, %v1086_v25, %v1085_v33 }
  0xfb   : > { %v356_v35 = vsel %vm355_vm4, %v354_v26, %v353_v30  ;;  %v797_v36 = vsel %vm355_vm4, %v2058_v12, %v796_v31  ;;  %v507_v44 = vsel %vm355_vm4, %v506_v39, %v505_v37  ;;  %v1089_v45 = vsel %vm355_vm4, %v1088_v40, %v1087_v38 }
  0xfc   : > { %1691 = vmatpush3.msk.msra.mxu1 %vm361_vm5, %v356_v35  ;;  %1706 = vmatpush3.msk.msra.mxu0 %vm361_vm5, %v797_v36  ;;  %v1379_v49 = vsel %vm352_vm3, %v1378_v34, %v1377_v47  ;;  %v1380_v51 = vrot.slane %v2058_v12, 4  ;;  %v652_v53 = vsel %vm355_vm4, %v651_v46, %v650_v48  ;;  %v939_v55 = vsel %vm349_vm2, %v938_v52, %v937_v43 }
  0xfd   : > { %1693 = vmatmul.mubr.msk.f32.vlgmr.msra.gmra.mxu1 %vm357_vm6, %v235_v32  ;;  %1695 = vmatprep.subr.mxu1 %v1914_v6  ;;  %v941_v57 = vsel %vm352_vm3, %v940_v50, %v939_v55  ;;  %v1232_v58 = vrot.slane %v2064_v17, 4  ;;  %v942_v59 = vrot.slane %v2058_v12, 1  ;;  %v1231_v62 = vsel %vm349_vm2, %v1230_v60, %v1229_v56 }
  0xfe   : > { %1708 = vmatmul.mubr.msk.f32.vlgmr.msra.gmra.mxu0 %vm357_vm6, %v235_v32  ;;  %1715 = vmatprep.subr.mxu0 %v1914_v6  ;;  %v1381_v54 = vsel %vm355_vm4, %v1380_v51, %v1379_v49  ;;  %v1234_v0 = vrot.slane %v2058_v12, 3  ;;  %v2156_v10 = vsub.s32 %v439_v5, %v441_v7 }
  0xff   : > { %1696 = vmatpush3.msk.msra.mxu1 %vm361_vm5, %v507_v44  ;;  %1716 = vmatpush3.msk.msra.mxu0 %vm361_vm5, %v1089_v45  ;;  %v943_v61 = vsel %vm355_vm4, %v942_v59, %v941_v57  ;;  %v1233_v63 = vsel %vm352_vm3, %v1232_v58, %v1231_v62 }
 0x100   : > { %1697 = vmatprep.mubr.msk.f32.mxu1 %vm1915_vm1, %v1914_v6  ;;  %1700 = vmatprep.subr.mxu1 %v1914_v6  ;;  %v1235_v1 = vsel %vm355_vm4, %v1234_v0, %v1233_v63 }
 0x101   : > { %1717 = vmatprep.mubr.msk.f32.mxu0 %vm1915_vm1, %v1914_v6  ;;  %1725 = vmatprep.subr.mxu0 %v1914_v6 }
 0x102   : > { %1698 = vmatmul.mubr.msk.f32.vlgmr.msra.gmra.mxu1 %vm357_vm6, %v235_v32  ;;  %1718 = vmatmul.mubr.msk.f32.vlgmr.msra.gmra.mxu0 %vm357_vm6, %v235_v32 }
 0x103   : > { %1701 = vmatpush3.msk.msra.mxu1 %vm361_vm5, %v652_v53  ;;  %1726 = vmatpush3.msk.msra.mxu0 %vm361_vm5, %v1381_v54 }
 0x104   : > { %1702 = vmatprep.mubr.msk.f32.mxu1 %vm1915_vm1, %v1914_v6  ;;  %1710 = vmatprep.subr.mxu1 %v1914_v6 }
 0x105   : > { %1727 = vmatprep.mubr.msk.f32.mxu0 %vm1915_vm1, %v1914_v6 }
 0x106   : > { %1703 = vmatmul.mubr.msk.f32.vlgmr.msra.gmra.mxu1 %vm357_vm6, %v235_v32  ;;  %1728 = vmatmul.mubr.msk.f32.vlgmr.msra.gmra.mxu0 %vm357_vm6, %v235_v32 }
 0x107   : > { %1711 = vmatpush3.msk.msra.mxu1 %vm361_vm5, %v943_v61  ;;  %1712 = vmatprep.mubr.msk.f32.mxu1 %vm1915_vm1, %v1914_v6 }
 0x108   : > { %1720 = vmatprep.subr.mxu1 %v1914_v6 }
 0x10a   : > { %1713 = vmatmul.mubr.msk.f32.vlgmr.msra.gmra.mxu1 %vm357_vm6, %v235_v32 }
 0x10b   : > { %1721 = vmatpush3.msk.msra.mxu1 %vm361_vm5, %v1235_v1  ;;  %1722 = vmatprep.mubr.msk.f32.mxu1 %vm1915_vm1, %v1914_v6 }
 0x10e   : > { %1723 = vmatmul.mubr.msk.f32.vlgmr.msra.gmra.mxu1 %vm357_vm6, %v235_v32 }
 0x1bd   : > { %v430_v9 = vpop.f32.mrf.mxu1 }
 0x1be   : > { %v431_v11 = vadd.f32 %v430_v9, %v2154_v8  ;;  %v866_v12 = vpop.f32.mrf.mxu0 }
 0x1bf   : > { %v1694_v13 = vpop.f32.mrf.mxu1  ;;  %v867_v14 = vadd.f32 %v866_v12, %v2154_v8 }
 0x1c0   : > { %v434_v6 = vmax.f32 %v431_v11, 0.0  ;;  %v1709_v15 = vpop.f32.mrf.mxu0 }
 0x1c1   : > { %v870_v16 = vmax.f32 %v867_v14, 0.0 }
 0x1c2   : > { %v436_v17 = vcombine.high %v434_v6, %v434_v6  ;;  %v443_v18 = vrot.slane %v434_v6, %v2156_v10  ;;  %v576_v19 = vpop.f32.mrf.mxu1  ;;  %v1158_v20 = vpop.f32.mrf.mxu0 }
 0x1c3   : > { %v577_v21 = vadd.f32 %v576_v19, %v2154_v8  ;;  %v872_v22 = vcombine.high %v870_v16, %v870_v16  ;;  %v879_v23 = vrot.slane %v870_v16, %v2156_v10  ;;  %v1159_v28 = vadd.f32 %v1158_v20, %v2154_v8 }
 0x1c4   : > { %v450_v24 = vrot.slane %v436_v17, %v2156_v10  ;;  %v451_v25 = vcombine.high %v443_v18, %v443_v18  ;;  %v459_v26 = vrot.slane %v443_v18, %v2156_v10  ;;  %v1699_v27 = vpop.f32.mrf.mxu1  ;;  %v1719_v29 = vpop.f32.mrf.mxu0 }
 0x1c5   : > { %v580_v30 = vmax.f32 %v577_v21, 0.0  ;;  %v886_v31 = vrot.slane %v872_v22, %v2156_v10  ;;  %v887_v32 = vcombine.high %v879_v23, %v879_v23  ;;  %v895_v33 = vrot.slane %v879_v23, %v2156_v10 }
 0x1c6   : > { %v452_v34 = vcombine.high %v450_v24, %v450_v24  ;;  %v466_v35 = vrot.slane %v450_v24, %v2156_v10  ;;  %v473_v36 = vrot.slane %v451_v25, %v2156_v10  ;;  %v481_v37 = vcombine.high %v459_v26, %v459_v26  ;;  %494 = vst.msk [vmem:[%s2171_s26] sm:$0x1] %vm493_vm7, %v459_v26  ;;  %v721_v38 = vpop.f32.mrf.mxu1  ;;  %v1450_v39 = vpop.f32.mrf.mxu0 }
 0x1c7   : > { %v582_v40 = vcombine.high %v580_v30, %v580_v30  ;;  %v589_v41 = vrot.slane %v580_v30, %v2156_v10  ;;  %v888_v42 = vcombine.high %v886_v31, %v886_v31  ;;  %v902_v43 = vrot.slane %v886_v31, %v2156_v10  ;;  %929 = vst.msk [vmem:[%s2171_s26 + $0x3] sm:$0x1] %vm493_vm7, %v895_v33 }
 0x1c8   : > { %v480_v44 = vrot.slane %v452_v34, %v2156_v10  ;;  %v482_v45 = vcombine.high %v466_v35, %v466_v35  ;;  %v483_v46 = vcombine.high %v473_v36, %v473_v36  ;;  %495 = vst.msk [vmem:[%s2171_s26 + $0x8] sm:$0x1] %vm493_vm7, %v473_v36  ;;  %496 = vst.msk [vmem:[%s2171_s26 + $0x10] sm:$0x1] %vm493_vm7, %v481_v37  ;;  %v1704_v48 = vpop.f32.mrf.mxu1  ;;  %v1729_v49 = vpop.f32.mrf.mxu0  ;;  %v1162_v1 = vmax.f32 %v1159_v28, 0.0 }
 0x1c9   : > { %498 = vst.msk [vmem:[%s2171_s26 + $0x20] sm:$0x1] %vm493_vm7, %v466_v35  ;;  %v909_v47 = vrot.slane %v887_v32, %v2156_v10  ;;  %v596_v50 = vrot.slane %v582_v40, %v2156_v10  ;;  %v597_v51 = vcombine.high %v589_v41, %v589_v41  ;;  %v605_v52 = vrot.slane %v589_v41, %v2156_v10 }
 0x1ca   : > { %v916_v53 = vrot.slane %v888_v42, %v2156_v10  ;;  %933 = vst.msk [vmem:[%s2171_s26 + $0x23] sm:$0x1] %vm493_vm7, %v902_v43  ;;  %v484_v54 = vcombine.high %v480_v44, %v480_v44  ;;  %497 = vst.msk [vmem:[%s2171_s26 + $0x18] sm:$0x1] %vm493_vm7, %v483_v46  ;;  %v917_v55 = vcombine.high %v895_v33, %v895_v33  ;;  %v1012_v58 = vpop.f32.mrf.mxu1 }
 0x1cb   : > { %499 = vst.msk [vmem:[%s2171_s26 + $0x28] sm:$0x1] %vm493_vm7, %v480_v44  ;;  %500 = vst.msk [vmem:[%s2171_s26 + $0x30] sm:$0x1] %vm493_vm7, %v482_v45  ;;  %v918_v56 = vcombine.high %v902_v43, %v902_v43  ;;  %v919_v57 = vcombine.high %v909_v47, %v909_v47  ;;  %v598_v59 = vcombine.high %v596_v50, %v596_v50 }
 0x1cc   : > { %930 = vst.msk [vmem:[%s2171_s26 + $0xb] sm:$0x1] %vm493_vm7, %v909_v47  ;;  %v612_v60 = vrot.slane %v596_v50, %v2156_v10  ;;  %v619_v61 = vrot.slane %v597_v51, %v2156_v10  ;;  %v627_v62 = vcombine.high %v605_v52, %v605_v52  ;;  %639 = vst.msk [vmem:[%s2171_s26 + $0x1] sm:$0x1] %vm493_vm7, %v605_v52  ;;  %v1714_v3 = vpop.f32.mrf.mxu1 }
 0x1cd   : > { %934 = vst.msk [vmem:[%s2171_s26 + $0x2b] sm:$0x1] %vm493_vm7, %v916_v53  ;;  %501 = vst.msk [vmem:[%s2171_s26 + $0x38] sm:$0x1] %vm493_vm7, %v484_v54  ;;  %v920_v63 = vcombine.high %v916_v53, %v916_v53  ;;  %v722_v0 = vadd.f32 %v721_v38, %v2154_v8  ;;  %v1013_v2 = vadd.f32 %v1012_v58, %v2154_v8 }
 0x1ce   : > { %931 = vst.msk [vmem:[%s2171_s26 + $0x13] sm:$0x1] %vm493_vm7, %v917_v55  ;;  %932 = vst.msk [vmem:[%s2171_s26 + $0x1b] sm:$0x1] %vm493_vm7, %v919_v57  ;;  %v626_v4 = vrot.slane %v598_v59, %v2156_v10  ;;  %v628_v5 = vcombine.high %v612_v60, %v612_v60  ;;  %v629_v7 = vcombine.high %v619_v61, %v619_v61  ;;  %v1304_v6 = vpop.f32.mrf.mxu1 }
 0x1cf   : > { %935 = vst.msk [vmem:[%s2171_s26 + $0x33] sm:$0x1] %vm493_vm7, %v918_v56  ;;  %640 = vst.msk [vmem:[%s2171_s26 + $0x9] sm:$0x1] %vm493_vm7, %v619_v61  ;;  %v1451_v9 = vadd.f32 %v1450_v39, %v2154_v8  ;;  %v725_v11 = vmax.f32 %v722_v0, 0.0  ;;  %v1164_v12 = vcombine.high %v1162_v1, %v1162_v1  ;;  %v1171_v13 = vrot.slane %v1162_v1, %v2156_v10 }
 0x1d0   : > { %641 = vst.msk [vmem:[%s2171_s26 + $0x11] sm:$0x1] %vm493_vm7, %v627_v62  ;;  %643 = vst.msk [vmem:[%s2171_s26 + $0x21] sm:$0x1] %vm493_vm7, %v612_v60  ;;  %v1016_v14 = vmax.f32 %v1013_v2, 0.0  ;;  %v630_v15 = vcombine.high %v626_v4, %v626_v4  ;;  %v1305_v17 = vadd.f32 %v1304_v6, %v2154_v8  ;;  %v1724_v22 = vpop.f32.mrf.mxu1 }
 0x1d1   : > { %936 = vst.msk [vmem:[%s2171_s26 + $0x3b] sm:$0x1] %vm493_vm7, %v920_v63  ;;  %642 = vst.msk [vmem:[%s2171_s26 + $0x19] sm:$0x1] %vm493_vm7, %v629_v7  ;;  %v1454_v16 = vmax.f32 %v1451_v9, 0.0  ;;  %v727_v18 = vcombine.high %v725_v11, %v725_v11  ;;  %v734_v19 = vrot.slane %v725_v11, %v2156_v10  ;;  %v1178_v20 = vrot.slane %v1164_v12, %v2156_v10 }
 0x1d2   : > { %644 = vst.msk [vmem:[%s2171_s26 + $0x29] sm:$0x1] %vm493_vm7, %v626_v4  ;;  %645 = vst.msk [vmem:[%s2171_s26 + $0x31] sm:$0x1] %vm493_vm7, %v628_v5  ;;  %v1179_v21 = vcombine.high %v1171_v13, %v1171_v13  ;;  %v1187_v23 = vrot.slane %v1171_v13, %v2156_v10  ;;  %v1018_v24 = vcombine.high %v1016_v14, %v1016_v14  ;;  %v1308_v57 = vmax.f32 %v1305_v17, 0.0 }
 0x1d3   : > { %646 = vst.msk [vmem:[%s2171_s26 + $0x39] sm:$0x1] %vm493_vm7, %v630_v15  ;;  %v1025_v25 = vrot.slane %v1016_v14, %v2156_v10  ;;  %v1456_v26 = vcombine.high %v1454_v16, %v1454_v16  ;;  %v741_v27 = vrot.slane %v727_v18, %v2156_v10  ;;  %v742_v8 = vcombine.high %v734_v19, %v734_v19 }
 0x1d4   : > { %v750_v28 = vrot.slane %v734_v19, %v2156_v10  ;;  %v1180_v29 = vcombine.high %v1178_v20, %v1178_v20  ;;  %v1194_v30 = vrot.slane %v1178_v20, %v2156_v10  ;;  %v1201_v31 = vrot.slane %v1179_v21, %v2156_v10  ;;  %1221 = vst.msk [vmem:[%s2171_s26 + $0x5] sm:$0x1] %vm493_vm7, %v1187_v23 }
 0x1d5   : > { %v1209_v32 = vcombine.high %v1187_v23, %v1187_v23  ;;  %v1032_v33 = vrot.slane %v1018_v24, %v2156_v10  ;;  %v743_v34 = vcombine.high %v741_v27, %v741_v27  ;;  %v757_v35 = vrot.slane %v741_v27, %v2156_v10 }
 0x1d6   : > { %v764_v36 = vrot.slane %v742_v8, %v2156_v10  ;;  %v772_v37 = vcombine.high %v750_v28, %v750_v28  ;;  %784 = vst.msk [vmem:[%s2171_s26 + $0x2] sm:$0x1] %vm493_vm7, %v750_v28  ;;  %v1208_v38 = vrot.slane %v1180_v29, %v2156_v10  ;;  %v1210_v39 = vcombine.high %v1194_v30, %v1194_v30 }
 0x1d7   : > { %v1211_v40 = vcombine.high %v1201_v31, %v1201_v31  ;;  %1222 = vst.msk [vmem:[%s2171_s26 + $0xd] sm:$0x1] %vm493_vm7, %v1201_v31  ;;  %1223 = vst.msk [vmem:[%s2171_s26 + $0x15] sm:$0x1] %vm493_vm7, %v1209_v32  ;;  %v1033_v41 = vcombine.high %v1025_v25, %v1025_v25  ;;  %v771_v42 = vrot.slane %v743_v34, %v2156_v10 }
 0x1d8   : > { %1225 = vst.msk [vmem:[%s2171_s26 + $0x25] sm:$0x1] %vm493_vm7, %v1194_v30  ;;  %v773_v43 = vcombine.high %v757_v35, %v757_v35  ;;  %v774_v44 = vcombine.high %v764_v36, %v764_v36  ;;  %785 = vst.msk [vmem:[%s2171_s26 + $0xa] sm:$0x1] %vm493_vm7, %v764_v36  ;;  %v1034_v45 = vcombine.high %v1032_v33, %v1032_v33 }
 0x1d9   : > { %786 = vst.msk [vmem:[%s2171_s26 + $0x12] sm:$0x1] %vm493_vm7, %v772_v37  ;;  %788 = vst.msk [vmem:[%s2171_s26 + $0x22] sm:$0x1] %vm493_vm7, %v757_v35  ;;  %v1212_v46 = vcombine.high %v1208_v38, %v1208_v38  ;;  %v1041_v47 = vrot.slane %v1025_v25, %v2156_v10  ;;  %v1048_v48 = vrot.slane %v1032_v33, %v2156_v10 }
 0x1da   : > { %1224 = vst.msk [vmem:[%s2171_s26 + $0x1d] sm:$0x1] %vm493_vm7, %v1211_v40  ;;  %1226 = vst.msk [vmem:[%s2171_s26 + $0x2d] sm:$0x1] %vm493_vm7, %v1208_v38  ;;  %v1055_v49 = vrot.slane %v1033_v41, %v2156_v10  ;;  %v775_v50 = vcombine.high %v771_v42, %v771_v42  ;;  %v1062_v51 = vrot.slane %v1034_v45, %v2156_v10 }
 0x1db   : > { %1227 = vst.msk [vmem:[%s2171_s26 + $0x35] sm:$0x1] %vm493_vm7, %v1210_v39  ;;  %787 = vst.msk [vmem:[%s2171_s26 + $0x1a] sm:$0x1] %vm493_vm7, %v774_v44  ;;  %v1463_v52 = vrot.slane %v1454_v16, %v2156_v10  ;;  %v1470_v53 = vrot.slane %v1456_v26, %v2156_v10  ;;  %v1063_v54 = vcombine.high %v1041_v47, %v1041_v47 }
 0x1dc   : > { %789 = vst.msk [vmem:[%s2171_s26 + $0x2a] sm:$0x1] %vm493_vm7, %v771_v42  ;;  %790 = vst.msk [vmem:[%s2171_s26 + $0x32] sm:$0x1] %vm493_vm7, %v773_v43  ;;  %v1064_v55 = vcombine.high %v1048_v48, %v1048_v48  ;;  %v1065_v56 = vcombine.high %v1055_v49, %v1055_v49  ;;  %v1066_v58 = vcombine.high %v1062_v51, %v1062_v51 }
 0x1dd   : > { %1228 = vst.msk [vmem:[%s2171_s26 + $0x3d] sm:$0x1] %vm493_vm7, %v1212_v46  ;;  %1075 = vst.msk [vmem:[%s2171_s26 + $0x4] sm:$0x1] %vm493_vm7, %v1041_v47  ;;  %v1471_v59 = vcombine.high %v1463_v52, %v1463_v52  ;;  %v1472_v60 = vcombine.high %v1470_v53, %v1470_v53  ;;  %v1479_v61 = vrot.slane %v1463_v52, %v2156_v10 }
 0x1de   : > { %1076 = vst.msk [vmem:[%s2171_s26 + $0xc] sm:$0x1] %vm493_vm7, %v1055_v49  ;;  %1079 = vst.msk [vmem:[%s2171_s26 + $0x24] sm:$0x1] %vm493_vm7, %v1048_v48  ;;  %v1486_v62 = vrot.slane %v1470_v53, %v2156_v10  ;;  %v1310_v63 = vcombine.high %v1308_v57, %v1308_v57  ;;  %v1317_v0 = vrot.slane %v1308_v57, %v2156_v10 }
 0x1df   : > { %791 = vst.msk [vmem:[%s2171_s26 + $0x3a] sm:$0x1] %vm493_vm7, %v775_v50  ;;  %1080 = vst.msk [vmem:[%s2171_s26 + $0x2c] sm:$0x1] %vm493_vm7, %v1062_v51  ;;  %v1493_v1 = vrot.slane %v1471_v59, %v2156_v10  ;;  %v1500_v2 = vrot.slane %v1472_v60, %v2156_v10  ;;  %v1501_v3 = vcombine.high %v1479_v61, %v1479_v61 }
 0x1e0   : > { %1077 = vst.msk [vmem:[%s2171_s26 + $0x14] sm:$0x1] %vm493_vm7, %v1063_v54  ;;  %1078 = vst.msk [vmem:[%s2171_s26 + $0x1c] sm:$0x1] %vm493_vm7, %v1065_v56  ;;  %v1502_v4 = vcombine.high %v1486_v62, %v1486_v62  ;;  %v1324_v5 = vrot.slane %v1310_v63, %v2156_v10  ;;  %v1325_v7 = vcombine.high %v1317_v0, %v1317_v0 }
 0x1e1   : > { %1081 = vst.msk [vmem:[%s2171_s26 + $0x34] sm:$0x1] %vm493_vm7, %v1064_v55  ;;  %1082 = vst.msk [vmem:[%s2171_s26 + $0x3c] sm:$0x1] %vm493_vm7, %v1066_v58  ;;  %v1333_v9 = vrot.slane %v1317_v0, %v2156_v10  ;;  %v1503_v11 = vcombine.high %v1493_v1, %v1493_v1  ;;  %v1504_v12 = vcombine.high %v1500_v2, %v1500_v2 }
 0x1e2   : > { %1513 = vst.msk [vmem:[%s2171_s26 + $0x7] sm:$0x1] %vm493_vm7, %v1479_v61  ;;  %1517 = vst.msk [vmem:[%s2171_s26 + $0x27] sm:$0x1] %vm493_vm7, %v1486_v62  ;;  %v1326_v13 = vcombine.high %v1324_v5, %v1324_v5  ;;  %v1340_v14 = vrot.slane %v1324_v5, %v2156_v10  ;;  %v1347_v6 = vrot.slane %v1325_v7, %v2156_v10 }
 0x1e3   : > { %1514 = vst.msk [vmem:[%s2171_s26 + $0xf] sm:$0x1] %vm493_vm7, %v1493_v1  ;;  %1515 = vst.msk [vmem:[%s2171_s26 + $0x17] sm:$0x1] %vm493_vm7, %v1501_v3  ;;  %v1355_v15 = vcombine.high %v1333_v9, %v1333_v9 }
 0x1e4   : > { %1518 = vst.msk [vmem:[%s2171_s26 + $0x2f] sm:$0x1] %vm493_vm7, %v1500_v2  ;;  %1519 = vst.msk [vmem:[%s2171_s26 + $0x37] sm:$0x1] %vm493_vm7, %v1502_v4  ;;  %v1354_v16 = vrot.slane %v1326_v13, %v2156_v10  ;;  %v1356_v17 = vcombine.high %v1340_v14, %v1340_v14  ;;  %v1357_v18 = vcombine.high %v1347_v6, %v1347_v6 }
 0x1e5   : > { %1367 = vst.msk [vmem:[%s2171_s26 + $0x6] sm:$0x1] %vm493_vm7, %v1333_v9  ;;  %1516 = vst.msk [vmem:[%s2171_s26 + $0x1f] sm:$0x1] %vm493_vm7, %v1503_v11 }
 0x1e6   : > { %1520 = vst.msk [vmem:[%s2171_s26 + $0x3f] sm:$0x1] %vm493_vm7, %v1504_v12  ;;  %1368 = vst.msk [vmem:[%s2171_s26 + $0xe] sm:$0x1] %vm493_vm7, %v1347_v6  ;;  %v1358_v10 = vcombine.high %v1354_v16, %v1354_v16 }
 0x1e7   : > { %1369 = vst.msk [vmem:[%s2171_s26 + $0x16] sm:$0x1] %vm493_vm7, %v1355_v15  ;;  %1371 = vst.msk [vmem:[%s2171_s26 + $0x26] sm:$0x1] %vm493_vm7, %v1340_v14 }
 0x1e8   : > { %1370 = vst.msk [vmem:[%s2171_s26 + $0x1e] sm:$0x1] %vm493_vm7, %v1357_v18  ;;  %1372 = vst.msk [vmem:[%s2171_s26 + $0x2e] sm:$0x1] %vm493_vm7, %v1354_v16 }
 0x1e9   : > { %1373 = vst.msk [vmem:[%s2171_s26 + $0x36] sm:$0x1] %vm493_vm7, %v1356_v17  ;;  %1374 = vst.msk [vmem:[%s2171_s26 + $0x3e] sm:$0x1] %vm493_vm7, %v1358_v10 }
 0x1ea   : > { %1842 = shalt.err (!%p1839_p6)
}
 0x1eb   : > { %s1843_s27 = scalar_lea.hbm %s2342_s8, 1024  ;;  %s1847_s22 = scalar_lea.hbm %s2404_s4, 2048 }
 0x1ec   : > { %p1844_p7 = scmp.ne.s32.totalorder %s2342_s8, %s1843_s27  ;;  %p1848_p13 = scmp.lt.s32.totalorder %s2342_s8, %s2404_s4 }
 0x1ed   : > { %p1849_p2 = scmp.lt.s32.totalorder %s1847_s22, %s1843_s27 }
 0x1ee   : > { %p1845_p10 = pnand %p1844_p7, %p1997_p9 }
 0x1ef   : > { %p1850_p8 = por %p1849_p2, %p1848_p13 }
 0x1f0   : > { %p1846_p4 = pneg %p1845_p10 }
 0x1f2   : > { %p1851_p12 = pnand %p1850_p8, %p1846_p4 }
 0x1f4   : > { %1854 = shalt.err (!%p1851_p12)
}
 0x1f5   : > { %s1919_s25 = smov 128   ;;  %s1920_s7 = smov 8  }
 0x1f6   : > { %1732 = dma.vmem_to_hbm [thread:$0]  (%p1997_p9), %s2344_s5, 1024, %s2342_s8, %s1522_s9, %s1919_s25, %s1919_s25, %s1920_s7  }
 0x1f7 PF: > { %s1551_s18 = sand.u32 1, %s1889_s15   ;;  %p2410_p0 = scmp.ge.s32.totalorder %s1909_s20, 2 }
 0x1f8   : > { %s1552_s10 = scalar_lea.sflag [#allocation4], %s1551_s18 }
 0x1f9   : > { %p1739_p1 = pnand %p2410_p0, %p2004_p11 }
 0x1fb   : > { %p1740_p3 = pneg %p1739_p1 }
 0x1fd   : > { %1884 = dma.done.wait (%p1740_p3), %s1552_s10, 1024  }
 0x1fe   : > { %1886 = vsyncadd (%p1740_p3), %s1552_s10, 4294966272  ;;  %s20_s20 = sadd.s32 1, %s1909_s20   ;;  %s2411_s15 = smov %s1893_s16 }
 0x1ff   : > { %p17_p5 = scmp.ge.s32.totalorder %s20_s20, 4   ;;  %s2412_s16 = smov %s1897_s17 }
 0x200   : > { %s2413_s17 = smov %s2002_s29  ;;  %s2414_s18 = smov %s1905_s19 }
 0x201   : > { %s2415_s19 = smov %s2417_s23  ;;  %19 = sbr.rel (!%p17_p5) target bundleno = 6 (0x6), region = 81 }
 0x206   :  { %1557 = vsyncpa [#allocation3], 1 }
 0x207   :  { %1559 = vsyncpa [#allocation3 + $0x1], 1 }
 0x208   :  { %1560 = vsyncpa [#allocation4], 1 }
 0x209   :  { %1562 = vsyncpa [#allocation4 + $0x1], 1 }

</bundles_post_ra>
